<compile_context>
chip_gen: v6e
topology: v6e:2x2x1
jax: 0.10.0
libtpu: 0.0.40
codegen_flags: <defaults>
</compile_context>

<pallas_src>
import jax
import jax.numpy as jnp
from jax.experimental import pallas as pl
from jax.experimental.pallas import tpu as pltpu


# ----------------------------------------------------------------------
# Kernels
# ----------------------------------------------------------------------
def _noisy_small_kernel(x_ref, mu_w_ref, sig_w_ref, eps_in_ref, eps_out_ref,
                        b_ref, o_ref):
    # Noised (K, N) weight built on-chip from the factorized noise vectors.
    noise = eps_in_ref[...] * eps_out_ref[...]                     # (K,N) f32
    w = (mu_w_ref[...].astype(jnp.float32)
         + sig_w_ref[...].astype(jnp.float32) * noise).astype(x_ref.dtype)
    y = jnp.dot(x_ref[...], w, preferred_element_type=jnp.float32)
    o_ref[...] = (y + b_ref[...]).astype(o_ref.dtype)


def _plain_small_kernel(x_ref, mu_w_ref, b_ref, o_ref):
    y = jnp.dot(x_ref[...], mu_w_ref[...],
                preferred_element_type=jnp.float32)
    o_ref[...] = (y + b_ref[...]).astype(o_ref.dtype)


def _noisy_tiled_kernel(x_ref, mu_w_ref, sig_w_ref, eps_in_ref, eps_out_ref,
                        b_ref, o_ref, acc_ref):
    k = pl.program_id(2)

    @pl.when(k == 0)
    def _():
        acc_ref[...] = jnp.zeros_like(acc_ref)

    # Noised (tk, tn) weight tile; f32 VPU math, cast to the MXU input dtype.
    # NOTE: this rebuild depends only on (j, k); if a v5e bundle dump ever
    # shows VALU as the binding slot, cache it in VMEM keyed on (j, k) or use
    # the algebraic split y = x@mu_w + eps_out*((x*eps_in)@sig_w).
    noise = eps_in_ref[...] * eps_out_ref[...]
    w = (mu_w_ref[...].astype(jnp.float32)
         + sig_w_ref[...].astype(jnp.float32) * noise).astype(x_ref.dtype)
    acc_ref[...] += jnp.dot(x_ref[...], w, preferred_element_type=jnp.float32)

    @pl.when(k == pl.num_programs(2) - 1)
    def _():
        o_ref[...] = (acc_ref[...] + b_ref[...]).astype(o_ref.dtype)


def _plain_tiled_kernel(x_ref, mu_w_ref, b_ref, o_ref, acc_ref):
    k = pl.program_id(2)

    @pl.when(k == 0)
    def _():
        acc_ref[...] = jnp.zeros_like(acc_ref)

    acc_ref[...] += jnp.dot(x_ref[...], mu_w_ref[...],
                            preferred_element_type=jnp.float32)

    @pl.when(k == pl.num_programs(2) - 1)
    def _():
        o_ref[...] = (acc_ref[...] + b_ref[...]).astype(o_ref.dtype)


# ----------------------------------------------------------------------
# One-time parameter preparation (per reset_noise / param update)
# ----------------------------------------------------------------------
def _round_up(x, m):
    return ((x + m - 1) // m) * m


def _pad2(a, rows, cols):
    pr, pc = rows - a.shape[0], cols - a.shape[1]
    if pr == 0 and pc == 0:
        return a
    return jnp.pad(a, ((0, pr), (0, pc)))


def prepare_noisy_linear(mu_w, sig_w, mu_b, sig_b, eps_in, eps_out, *,
                         compute_dtype=jnp.float32):
    """Transpose weights to K-major (in_f, out_f), pad to 128 alignment,
    optionally cast to bf16, and precompute the effective bias.  Do this once
    per noise reset / param update, NOT per forward call."""
    out_f, in_f = mu_w.shape
    in_p = _round_up(in_f, 128)
    out_p = _round_up(out_f, 128)
    cdt = jnp.dtype(compute_dtype)
    f32 = jnp.float32
    return {
        "in_f": in_f, "out_f": out_f, "in_p": in_p, "out_p": out_p,
        "compute_dtype": cdt,
        "mu_w_t": _pad2(mu_w.T.astype(cdt), in_p, out_p),      # (in_p, out_p)
        "sig_w_t": _pad2(sig_w.T.astype(cdt), in_p, out_p),    # (in_p, out_p)
        "eps_in_col": _pad2(eps_in.astype(f32).reshape(in_f, 1), in_p, 1),
        "eps_out_row": _pad2(eps_out.astype(f32).reshape(1, out_f), 1, out_p),
        "mu_b_row": _pad2(mu_b.astype(f32).reshape(1, out_f), 1, out_p),
        "b_eff_row": _pad2((mu_b + sig_b * eps_out).astype(f32)
                           .reshape(1, out_f), 1, out_p),
    }


# ----------------------------------------------------------------------
# Forward wrapper
# ----------------------------------------------------------------------
def _pick_tile(dim_p, cap=512):
    for t in (512, 256, 128):
        if t <= cap and dim_p % t == 0:
            return t
    return 128


def noisy_linear(x, params, *, training=True, path="auto"):
    """NoisyLinear forward.  x: (B, in_f); params from prepare_noisy_linear.
    path: "auto" | "small" | "tiled"."""
    B, in_f = x.shape
    assert in_f == params["in_f"]
    out_f, in_p, out_p = params["out_f"], params["in_p"], params["out_p"]
    cdt = params["compute_dtype"]
    out_dtype = x.dtype

    # ---------------- tile choice (all dims already 128-aligned) ----------
    tk = _pick_tile(in_p)
    tn = _pick_tile(out_p)
    tm = min(512, _round_up(B, 8))
    B_p = _round_up(B, tm)

    # v7x has 2 TensorCores sharded over the parallel grid axes: make sure at
    # least one parallel axis has >= 2 iterations when possible.
    if B_p // tm == 1 and out_p // tn == 1:
        for t in (256, 128):
            if out_p % t == 0 and out_p // t >= 2:
                tn = t
                break

    # ---------------- cost / dispatch -------------------------------------
    n_w = 2 if training else 1
    w_itemsize = cdt.itemsize
    hbm_bytes = (w_itemsize * (B_p * in_p + n_w * in_p * out_p)
                 + 4 * (in_p + 2 * out_p)
                 + jnp.dtype(out_dtype).itemsize * B_p * out_p)
    cost = pl.CostEstimate(flops=2 * B * in_f * out_f, transcendentals=0,
                           bytes_accessed=int(hbm_bytes))

    if path == "auto":
        # grid=() has zero DMA/compute overlap, so only use it when total HBM
        # traffic is ~1 MiB (~1 us exposed even on v5e's 0.82 TB/s).
        use_small = hbm_bytes <= (1 << 20)
    elif path == "small":
        use_small = True
    elif path == "tiled":
        use_small = False
    else:
        raise ValueError(f"unknown path {path!r}")

    # Only the activation is padded per call (cheap); weights were padded and
    # transposed once in prepare_noisy_linear.
    x_p = _pad2(x.astype(cdt), B_p, in_p)

    # =======================  single-block path  ==========================
    if use_small:
        def spec2(r, c):
            return pl.BlockSpec((r, c), lambda i: (0, 0))

        if training:
            y_p = pl.pallas_call(
                _noisy_small_kernel,
                out_shape=jax.ShapeDtypeStruct((B_p, out_p), out_dtype),
                grid=(1,),
                in_specs=[
                    spec2(B_p, in_p),        # x
                    spec2(in_p, out_p),      # mu_w (K, N)
                    spec2(in_p, out_p),      # sig_w (K, N)
                    spec2(in_p, 1),          # eps_in column
                    spec2(1, out_p),         # eps_out row
                    spec2(1, out_p),         # b_eff row
                ],
                out_specs=spec2(B_p, out_p),
                cost_estimate=cost,
            )(x_p, params["mu_w_t"], params["sig_w_t"], params["eps_in_col"],
              params["eps_out_row"], params["b_eff_row"])
        else:
            y_p = pl.pallas_call(
                _plain_small_kernel,
                out_shape=jax.ShapeDtypeStruct((B_p, out_p), out_dtype),
                grid=(1,),
                in_specs=[spec2(B_p, in_p), spec2(in_p, out_p),
                          spec2(1, out_p)],
                out_specs=spec2(B_p, out_p),
                cost_estimate=cost,
            )(x_p, params["mu_w_t"], params["mu_b_row"])
        return y_p[:B, :out_f]

    # ==========================  tiled path  ==============================
    grid = (B_p // tm, out_p // tn, in_p // tk)     # K (reduction) axis last
    compiler_params = pltpu.CompilerParams(
        dimension_semantics=("parallel", "parallel", "arbitrary"),
        vmem_limit_bytes=32 * 1024 * 1024,          # safe on v5e/v6e/v7x
    )

    x_spec = pl.BlockSpec((tm, tk), lambda i, j, k: (i, k))
    w_spec = pl.BlockSpec((tk, tn), lambda i, j, k: (k, j))     # K-major RHS
    eps_in_spec = pl.BlockSpec((tk, 1), lambda i, j, k: (k, 0))
    row_spec = pl.BlockSpec((1, tn), lambda i, j, k: (0, j))
    out_spec = pl.BlockSpec((tm, tn), lambda i, j, k: (i, j))

    if training:
        grid_spec = pltpu.PrefetchScalarGridSpec(
            num_scalar_prefetch=0, grid=grid,
            in_specs=[x_spec, w_spec, w_spec, eps_in_spec, row_spec, row_spec],
            out_specs=out_spec,
            scratch_shapes=[pltpu.VMEM((tm, tn), jnp.float32)])
        y_p = pl.pallas_call(
            _noisy_tiled_kernel,
            out_shape=jax.ShapeDtypeStruct((B_p, out_p), out_dtype),
            grid_spec=grid_spec,
            compiler_params=compiler_params,
            cost_estimate=cost,
        )(x_p, params["mu_w_t"], params["sig_w_t"], params["eps_in_col"],
          params["eps_out_row"], params["b_eff_row"])
    else:
        grid_spec = pltpu.PrefetchScalarGridSpec(
            num_scalar_prefetch=0, grid=grid,
            in_specs=[x_spec, w_spec, row_spec],
            out_specs=out_spec,
            scratch_shapes=[pltpu.VMEM((tm, tn), jnp.float32)])
        y_p = pl.pallas_call(
            _plain_tiled_kernel,
            out_shape=jax.ShapeDtypeStruct((B_p, out_p), out_dtype),
            grid_spec=grid_spec,
            compiler_params=compiler_params,
            cost_estimate=cost,
        )(x_p, params["mu_w_t"], params["mu_b_row"])

    return y_p[:B, :out_f]


# ----------------------------------------------------------------------
# Parameter / noise init matching the PyTorch module
# ----------------------------------------------------------------------
def _scale_noise(key, size):
    # torch: x = randn(size); x.sign() * x.abs().sqrt()
    x = jax.random.normal(key, (size,), dtype=jnp.float32)
    return jnp.sign(x) * jnp.sqrt(jnp.abs(x))


def init_noisy_linear_params(key, in_features, out_features, std_init=0.5):
    k_w, k_b, k_ein, k_eout = jax.random.split(key, 4)
    mu_range = 1.0 / (in_features ** 0.5)
    mu_w = jax.random.uniform(k_w, (out_features, in_features),
                              minval=-mu_range, maxval=mu_range,
                              dtype=jnp.float32)
    sig_w = jnp.full((out_features, in_features),
                     std_init / (in_features ** 0.5), dtype=jnp.float32)
    # NOTE: the reference reset_parameters never initializes mu_bias
    # (torch.empty leftover); we initialize it deterministically here.
    mu_b = jax.random.uniform(k_b, (out_features,),
                              minval=-mu_range, maxval=mu_range,
                              dtype=jnp.float32)
    sig_b = jnp.full((out_features,),
                     std_init / (out_features ** 0.5), dtype=jnp.float32)
    # reset_noise(): factorized Gaussian noise kept as the two vectors;
    # epsilon_weight == outer(eps_out, eps_in), epsilon_bias == eps_out.
    eps_in = _scale_noise(k_ein, in_features)
    eps_out = _scale_noise(k_eout, out_features)
    return mu_w, sig_w, mu_b, sig_b, eps_in, eps_out


if __name__ == "__main__":
    key = jax.random.PRNGKey(0)
    k_params, k_x = jax.random.split(key)

    batch, in_features, out_features = 8, 32, 64
    mu_w, sig_w, mu_b, sig_b, eps_in, eps_out = init_noisy_linear_params(
        k_params, in_features, out_features)
    x = jax.random.normal(k_x, (batch, in_features), dtype=jnp.float32)

    # Plain-JAX reference (module state after reset_noise()).
    w_eff = mu_w + sig_w * jnp.outer(eps_out, eps_in)
    b_eff = mu_b + sig_b * eps_out
    y_ref_train = x @ w_eff.T + b_eff
    y_ref_eval = x @ mu_w.T + mu_b

    # One-time prep (transpose to K-major, pad, precompute effective bias).
    params_f32 = prepare_noisy_linear(mu_w, sig_w, mu_b, sig_b,
                                      eps_in, eps_out)

    # Training-mode forward, auto (single-block) path.
    y = noisy_linear(x, params_f32, training=True)
    y = jax.block_until_ready(y)
    assert y.shape == (batch, out_features)
    assert jnp.allclose(y, y_ref_train, atol=1e-5, rtol=1e-5)

    # Training-mode forward, forced tiled path (exercises the 3-D grid).
    y_t = noisy_linear(x, params_f32, training=True, path="tiled")
    y_t = jax.block_until_ready(y_t)
    assert jnp.allclose(y_t, y_ref_train, atol=1e-5, rtol=1e-5)

    # Eval-mode forward: noise operands are never DMA'd.
    y_e = noisy_linear(x, params_f32, training=False)
    y_e = jax.block_until_ready(y_e)
    assert jnp.allclose(y_e, y_ref_eval, atol=1e-5, rtol=1e-5)

    y_et = noisy_linear(x, params_f32, training=False, path="tiled")
    y_et = jax.block_until_ready(y_et)
    assert jnp.allclose(y_et, y_ref_eval, atol=1e-5, rtol=1e-5)

    # bf16 weight/activation streams (halves the dominant HBM traffic); noise
    # math stays f32 and accumulation stays f32, so accuracy loss is bf16-level.
    params_bf16 = prepare_noisy_linear(mu_w, sig_w, mu_b, sig_b, eps_in,
                                       eps_out, compute_dtype=jnp.bfloat16)
    y_bf = noisy_linear(x, params_bf16, training=True, path="tiled")
    y_bf = jax.block_until_ready(y_bf)
    assert jnp.allclose(y_bf, y_ref_train, atol=1e-1, rtol=5e-2)

    print("KERNEL_OK")
</pallas_src>

<mosaic_0001>
module attributes {stable_mosaic.version = 11 : i64} {
  func.func @_noisy_small_kernel(%arg0: i32, %arg1: memref<8x128xf32, #tpu.memory_space<vmem>>, %arg2: memref<128x128xf32, #tpu.memory_space<vmem>>, %arg3: memref<128x128xf32, #tpu.memory_space<vmem>>, %arg4: memref<128x1xf32, #tpu.memory_space<vmem>>, %arg5: memref<1x128xf32, #tpu.memory_space<vmem>>, %arg6: memref<1x128xf32, #tpu.memory_space<vmem>>, %arg7: memref<8x128xf32, #tpu.memory_space<vmem>>) attributes {dimension_semantics = [#tpu.dimension_semantics<arbitrary>], iteration_bounds = array<i64: 1>, scalar_prefetch = 0 : i64, scratch_operands = 0 : i64, tpu.core_type = #tpu.core_type<tc>, window_params = [{pipeline_mode = #tpu.pipeline_mode<synchronous>, transform_indices = @transform_0, window_bounds = array<i64: 8, 128>}, {pipeline_mode = #tpu.pipeline_mode<synchronous>, transform_indices = @transform_1, window_bounds = array<i64: 128, 128>}, {pipeline_mode = #tpu.pipeline_mode<synchronous>, transform_indices = @transform_2, window_bounds = array<i64: 128, 128>}, {pipeline_mode = #tpu.pipeline_mode<synchronous>, transform_indices = @transform_3, window_bounds = array<i64: 128, 1>}, {pipeline_mode = #tpu.pipeline_mode<synchronous>, transform_indices = @transform_4, window_bounds = array<i64: 1, 128>}, {pipeline_mode = #tpu.pipeline_mode<synchronous>, transform_indices = @transform_5, window_bounds = array<i64: 1, 128>}, {pipeline_mode = #tpu.pipeline_mode<synchronous>, transform_indices = @transform_6, window_bounds = array<i64: 8, 128>}]} {
    %c0 = arith.constant 0 : index
    %c0_0 = arith.constant 0 : index
    %0 = vector.load %arg4[%c0, %c0_0] : memref<128x1xf32, #tpu.memory_space<vmem>>, vector<128x1xf32>
    %c0_1 = arith.constant 0 : index
    %c0_2 = arith.constant 0 : index
    %1 = vector.load %arg5[%c0_1, %c0_2] : memref<1x128xf32, #tpu.memory_space<vmem>>, vector<1x128xf32>
    %2 = vector.broadcast %0 : vector<128x1xf32> to vector<128x128xf32>
    %3 = vector.broadcast %1 : vector<1x128xf32> to vector<128x128xf32>
    %4 = arith.mulf %2, %3 : vector<128x128xf32>
    %c0_3 = arith.constant 0 : index
    %c0_4 = arith.constant 0 : index
    %5 = vector.load %arg2[%c0_3, %c0_4] : memref<128x128xf32, #tpu.memory_space<vmem>>, vector<128x128xf32>
    %c0_5 = arith.constant 0 : index
    %c0_6 = arith.constant 0 : index
    %6 = vector.load %arg3[%c0_5, %c0_6] : memref<128x128xf32, #tpu.memory_space<vmem>>, vector<128x128xf32>
    %7 = arith.mulf %6, %4 : vector<128x128xf32>
    %8 = arith.addf %5, %7 : vector<128x128xf32>
    %c0_7 = arith.constant 0 : index
    %c0_8 = arith.constant 0 : index
    %9 = vector.load %arg1[%c0_7, %c0_8] : memref<8x128xf32, #tpu.memory_space<vmem>>, vector<8x128xf32>
    %cst = arith.constant dense<0.000000e+00> : vector<8x128xf32>
    %10 = tpu.matmul %9, %8, %cst {dimension_numbers = #tpu.dot_dimension_numbers<[1], [0], [0], [1], [0, 0, 1, 1], [], []>} : vector<8x128xf32>, vector<128x128xf32>, vector<8x128xf32> -> vector<8x128xf32>
    %c0_9 = arith.constant 0 : index
    %c0_10 = arith.constant 0 : index
    %11 = vector.load %arg6[%c0_9, %c0_10] : memref<1x128xf32, #tpu.memory_space<vmem>>, vector<1x128xf32>
    %12 = vector.broadcast %11 : vector<1x128xf32> to vector<8x128xf32>
    %13 = arith.addf %10, %12 : vector<8x128xf32>
    %c0_11 = arith.constant 0 : index
    %c0_12 = arith.constant 0 : index
    %14 = vector.load %arg7[%c0_11, %c0_12] : memref<8x128xf32, #tpu.memory_space<vmem>>, vector<8x128xf32>
    tpu.vector_store %arg7[%c0_11, %c0_12], %13 {strides = array<i32>} : memref<8x128xf32, #tpu.memory_space<vmem>>, vector<8x128xf32>,
    return
  }
  func.func @transform_0(%arg0: i32) -> (i32, i32) {
    %c0_i32 = arith.constant 0 : i32
    %c0_i32_0 = arith.constant 0 : i32
    %c0_i32_1 = arith.constant 0 : i32
    return %c0_i32, %c0_i32_0 : i32, i32
  }
  func.func @transform_1(%arg0: i32) -> (i32, i32) {
    %c0_i32 = arith.constant 0 : i32
    %c0_i32_0 = arith.constant 0 : i32
    %c0_i32_1 = arith.constant 0 : i32
    return %c0_i32, %c0_i32_0 : i32, i32
  }
  func.func @transform_2(%arg0: i32) -> (i32, i32) {
    %c0_i32 = arith.constant 0 : i32
    %c0_i32_0 = arith.constant 0 : i32
    %c0_i32_1 = arith.constant 0 : i32
    return %c0_i32, %c0_i32_0 : i32, i32
  }
  func.func @transform_3(%arg0: i32) -> (i32, i32) {
    %c0_i32 = arith.constant 0 : i32
    %c0_i32_0 = arith.constant 0 : i32
    %c0_i32_1 = arith.constant 0 : i32
    return %c0_i32, %c0_i32_0 : i32, i32
  }
  func.func @transform_4(%arg0: i32) -> (i32, i32) {
    %c0_i32 = arith.constant 0 : i32
    %c0_i32_0 = arith.constant 0 : i32
    %c0_i32_1 = arith.constant 0 : i32
    return %c0_i32, %c0_i32_0 : i32, i32
  }
  func.func @transform_5(%arg0: i32) -> (i32, i32) {
    %c0_i32 = arith.constant 0 : i32
    %c0_i32_0 = arith.constant 0 : i32
    %c0_i32_1 = arith.constant 0 : i32
    return %c0_i32, %c0_i32_0 : i32, i32
  }
  func.func @transform_6(%arg0: i32) -> (i32, i32) {
    %c0_i32 = arith.constant 0 : i32
    %c0_i32_0 = arith.constant 0 : i32
    %c0_i32_1 = arith.constant 0 : i32
    return %c0_i32, %c0_i32_0 : i32, i32
  }
}

</mosaic_0001>

<bundles_post_ra>
// kernel: tpu_custom_call.1
= control target key start
LH: loop header
LB: loop body
LE: loop exit
PB: predicated region body
PF: predicated region fallthrough
CT: control target
= control target key end

     0   :  { %11 = vsyncpa [#allocation3], 0  ;;  %s647_s0 = inlined_call_operand.hbm [shape: f32[8,128], index: 0, kind: input, shape index: {}]   ;;  %s648_s1 = inlined_call_operand.vmem [shape: f32[128,128], index: 1, kind: input, shape index: {}]   ;;  %s649_s2 = inlined_call_operand.hbm [shape: f32[128,128], index: 2, kind: input, shape index: {}]   ;;  %s650_s3 = inlined_call_operand.vmem [shape: f32[128,1], index: 3, kind: input, shape index: {}]   ;;  %s651_s4 = inlined_call_operand.vmem [shape: f32[1,128], index: 4, kind: input, shape index: {}]   ;;  %s652_s5 = inlined_call_operand.vmem [shape: f32[1,128], index: 5, kind: input, shape index: {}]   ;;  %s653_s6 = inlined_call_operand.hbm [shape: f32[8,128], index: 6, kind: output, shape index: {}]  }
   0x1   :  { %12 = vsyncpa [#allocation6], 0 }
   0x2   :  { %13 = vsyncpa [#allocation4], 0  ;;  %s458_s21 = smov [#allocation2]   ;;  %s459_s23 = smov [#allocation5]  }
   0x3   :  { %s20_s22 = sshll.u32 %s458_s21, 4  ;;  %s31_s24 = sshll.u32 %s459_s23, 4  ;;  %s21_s22 = int_to_ptr.vmem [resolvable:$true] %s20_s22  ;;  %s32_s24 = int_to_ptr.vmem [resolvable:$true] %s31_s24 }
   0x4   :  { %s400_s25 = scalar_lea.vmem %s21_s22, 128  ;;  %p405_p1 = scmp.lt.s32.totalorder %s21_s22, %s21_s22 }
   0x5   :  { %p401_p0 = scmp.ne.s32.totalorder %s21_s22, %s400_s25  ;;  %p406_p2 = scmp.lt.s32.totalorder %s400_s25, %s400_s25 }
   0x7   :  { %p407_p3 = por %p406_p2, %p405_p1 }
   0x9   :  { %p408_p4 = pnand %p407_p3, %p401_p0 }
   0xb   :  { %411 = shalt.err (!%p408_p4)
}
   0xc   :  { %23 = dma.hbm_to_vmem [thread:$0]  %s647_s0, 128, %s21_s22, [#allocation3]  }
   0xd   :  { %s420_s28 = scalar_lea.vmem %s32_s24, 2048  ;;  %p425_p6 = scmp.lt.s32.totalorder %s32_s24, %s32_s24 }
   0xe   :  { %p421_p5 = scmp.ne.s32.totalorder %s32_s24, %s420_s28  ;;  %p426_p7 = scmp.lt.s32.totalorder %s420_s28, %s420_s28 }
  0x10   :  { %p427_p8 = por %p426_p7, %p425_p6 }
  0x12   :  { %p428_p9 = pnand %p427_p8, %p421_p5 }
  0x14   :  { %431 = shalt.err (!%p428_p9)
}
  0x15   :  { %s460_s29 = smov 128   ;;  %s461_s30 = smov 8  }
  0x16   :  { %37 = dma.hbm_to_vmem [thread:$0]  %s649_s2, 2048, %s32_s24, [#allocation6], %s460_s29, %s460_s29, %s461_s30  }
  0x17   :  { %452 = dma.done.wait [#allocation3], 128  }
  0x18   :  { %453 = vsyncadd [#allocation3], 4294967168 }
  0x19   :  { %454 = dma.done.wait [#allocation6], 2048  }
  0x1a   :  { %455 = vsyncadd [#allocation6], 4294965248  ;;  %v462_v0 = vmov 0   ;;  %v65_v1 = vld [vmem:[%s650_s3 + $0x78] sm:$0xff]  ;;  %v63_v2 = vld [vmem:[%s650_s3 + $0x68] sm:$0xff]  ;;  %v463_v5 = vmov 0.0  }
  0x1b   :  { %391 = vset.pattern.permute.xlu1 %v462_v0  ;;  %390 = vset.pattern.permute.xlu0 %v462_v0  ;;  %v64_v3 = vld [vmem:[%s650_s3 + $0x70] sm:$0xff]  ;;  %v62_v4 = vld [vmem:[%s650_s3 + $0x60] sm:$0xff]  ;;  %v61_v6 = vld [vmem:[%s650_s3 + $0x58] sm:$0xff]  ;;  %vm464_vm0 = vmmov 0   ;;  %s465_s19 = smov [#allocation7]  }
  0x1c   :  { %144 = vperm.xlu0 %390, %v65_v1   ;;  %134 = vperm.xlu1 %391, %v63_v2   ;;  %v60_v7 = vld [vmem:[%s650_s3 + $0x50] sm:$0xff]  ;;  %v59_v8 = vld [vmem:[%s650_s3 + $0x48] sm:$0xff]  ;;  %v58_v9 = vld [vmem:[%s650_s3 + $0x40] sm:$0xff]  ;;  %s318_s20 = sshll.u32 %s465_s19, 4  ;;  %s319_s20 = int_to_ptr.vmem [resolvable:$true] %s318_s20 }
  0x1d   :  { %347 = vmatprep.subr.mxu0 %v463_v5  ;;  %v57_v10 = vld [vmem:[%s650_s3 + $0x38] sm:$0xff]  ;;  %v56_v11 = vld [vmem:[%s650_s3 + $0x30] sm:$0xff]  ;;  %v55_v12 = vld [vmem:[%s650_s3 + $0x28] sm:$0xff]  ;;  %379 = vmatprep.mubr.msk.f32.mxu0 %vm464_vm0, %v463_v5  ;;  %p437_p11 = scmp.lt.s32.totalorder %s319_s20, %s319_s20 }
  0x1e   :  { %v54_v13 = vld [vmem:[%s650_s3 + $0x20] sm:$0xff]  ;;  %v53_v14 = vld [vmem:[%s650_s3 + $0x18] sm:$0xff]  ;;  %v52_v15 = vld [vmem:[%s650_s3 + $0x10] sm:$0xff] }
  0x1f   :  { %v51_v16 = vld [vmem:[%s650_s3 + $0x8] sm:$0xff]  ;;  %v50_v17 = vld [vmem:[%s650_s3] sm:$0xff]  ;;  %v184_v23 = vld [vmem:[%s648_s1 + $0x78] sm:$0xff] }
  0x20   :  { %139 = vperm.xlu0 %390, %v64_v3   ;;  %129 = vperm.xlu1 %391, %v62_v4   ;;  %v560_v18 = vld [vmem:[%s651_s4] ss:$0 sm:$0xff]  ;;  %v198_v26 = vld [vmem:[#allocation5 + $0x68] sm:$0xff]  ;;  %v199_v27 = vld [vmem:[#allocation5 + $0x70] sm:$0xff] }
  0x21   :  { %v200_v19 = vld [vmem:[#allocation5 + $0x78] sm:$0xff]  ;;  %v197_v33 = vld [vmem:[#allocation5 + $0x60] sm:$0xff]  ;;  %v183_v34 = vld [vmem:[%s648_s1 + $0x70] sm:$0xff] }
  0x22   :  { %v196_v37 = vld [vmem:[#allocation5 + $0x58] sm:$0xff]  ;;  %v182_v40 = vld [vmem:[%s648_s1 + $0x68] sm:$0xff]  ;;  %v195_v45 = vld [vmem:[#allocation5 + $0x50] sm:$0xff] }
  0x23   :  { %v181_v46 = vld [vmem:[%s648_s1 + $0x60] sm:$0xff]  ;;  %v194_v49 = vld [vmem:[#allocation5 + $0x48] sm:$0xff]  ;;  %v180_v52 = vld [vmem:[%s648_s1 + $0x58] sm:$0xff] }
  0x24   :  { %124 = vperm.xlu0 %390, %v61_v6   ;;  %119 = vperm.xlu1 %391, %v60_v7   ;;  %v193_v57 = vld [vmem:[#allocation5 + $0x40] sm:$0xff]  ;;  %v179_v58 = vld [vmem:[%s648_s1 + $0x50] sm:$0xff]  ;;  %v192_v61 = vld [vmem:[#allocation5 + $0x38] sm:$0xff] }
  0x25   :  { %v178_v0 = vld [vmem:[%s648_s1 + $0x48] sm:$0xff]  ;;  %v191_v6 = vld [vmem:[#allocation5 + $0x30] sm:$0xff]  ;;  %v177_v7 = vld [vmem:[%s648_s1 + $0x40] sm:$0xff] }
  0x28   :  { %114 = vperm.xlu0 %390, %v59_v8   ;;  %109 = vperm.xlu1 %391, %v58_v9  }
  0x2c   :  { %104 = vperm.xlu0 %390, %v57_v10   ;;  %99 = vperm.xlu1 %391, %v56_v11   ;;  %v190_v10 = vld [vmem:[#allocation5 + $0x28] sm:$0xff] }
  0x30   :  { %94 = vperm.xlu0 %390, %v55_v12   ;;  %89 = vperm.xlu1 %391, %v54_v13   ;;  %v176_v13 = vld [vmem:[%s648_s1 + $0x38] sm:$0xff] }
  0x34   :  { %84 = vperm.xlu0 %390, %v53_v14   ;;  %79 = vperm.xlu1 %391, %v52_v15  }
  0x38   :  { %74 = vperm.xlu0 %390, %v51_v16   ;;  %69 = vperm.xlu1 %391, %v50_v17  }
  0x97   :  { %v145_v20 = vpop.permute.xlu0 %144  ;;  %v135_v21 = vpop.permute.xlu1 %134 }
  0x98   :  { %v168_v22 = vmul.f32 %v560_v18, %v145_v20  ;;  %v166_v25 = vmul.f32 %v560_v18, %v135_v21  ;;  %v175_v20 = vld [vmem:[%s648_s1 + $0x30] sm:$0xff] }
  0x9a   :  { %v216_v24 = vmul.f32 %v200_v19, %v168_v22  ;;  %v214_v35 = vmul.f32 %v198_v26, %v166_v25  ;;  %v189_v19 = vld [vmem:[#allocation5 + $0x20] sm:$0xff] }
  0x9b   :  { %v140_v28 = vpop.permute.xlu0 %139  ;;  %v130_v29 = vpop.permute.xlu1 %129  ;;  %v174_v26 = vld [vmem:[%s648_s1 + $0x28] sm:$0xff] }
  0x9c   :  { %v167_v30 = vmul.f32 %v560_v18, %v140_v28  ;;  %v165_v31 = vmul.f32 %v560_v18, %v130_v29  ;;  %v232_v32 = vadd.f32 %v216_v24, %v184_v23  ;;  %v230_v48 = vadd.f32 %v214_v35, %v182_v40  ;;  %v188_v23 = vld [vmem:[#allocation5 + $0x18] sm:$0xff]  ;;  %v186_v35 = vld [vmem:[#allocation5 + $0x8] sm:$0xff] }
  0x9e   :  { %v215_v36 = vmul.f32 %v199_v27, %v167_v30  ;;  %348 = vmatpush3.msra.mxu0 %v232_v32  ;;  %v213_v41 = vmul.f32 %v197_v33, %v165_v31  ;;  %v187_v31 = vld [vmem:[#allocation5 + $0x10] sm:$0xff]  ;;  %v173_v32 = vld [vmem:[%s648_s1 + $0x20] sm:$0xff] }
  0x9f   :  { %v125_v38 = vpop.permute.xlu0 %124  ;;  %v120_v39 = vpop.permute.xlu1 %119  ;;  %349 = vmatprep.subr.mxu0 %v463_v5 }
  0xa0   :  { %v164_v42 = vmul.f32 %v560_v18, %v125_v38  ;;  %v163_v43 = vmul.f32 %v560_v18, %v120_v39  ;;  %v231_v44 = vadd.f32 %v215_v36, %v183_v34  ;;  %v229_v56 = vadd.f32 %v213_v41, %v181_v46  ;;  %v172_v38 = vld [vmem:[%s648_s1 + $0x18] sm:$0xff] }
  0xa2   :  { %v212_v47 = vmul.f32 %v196_v37, %v164_v42  ;;  %350 = vmatpush3.msra.mxu0 %v231_v44  ;;  %v211_v53 = vmul.f32 %v195_v45, %v163_v43  ;;  %v185_v43 = vld [vmem:[#allocation5] sm:$0xff]  ;;  %v171_v44 = vld [vmem:[%s648_s1 + $0x10] sm:$0xff] }
  0xa3   :  { %351 = vmatprep.subr.mxu0 %v463_v5  ;;  %v115_v50 = vpop.permute.xlu0 %114  ;;  %v110_v51 = vpop.permute.xlu1 %109 }
  0xa4   :  { %v162_v54 = vmul.f32 %v560_v18, %v115_v50  ;;  %v161_v55 = vmul.f32 %v560_v18, %v110_v51  ;;  %352 = vmatpush3.msra.mxu0 %v230_v48  ;;  %v228_v60 = vadd.f32 %v212_v47, %v180_v52  ;;  %v227_v4 = vadd.f32 %v211_v53, %v179_v58  ;;  %v170_v47 = vld [vmem:[%s648_s1 + $0x8] sm:$0xff]  ;;  %v233_v52 = vld [vmem:[#allocation2] sm:$0xff] }
  0xa5   :  { %353 = vmatprep.subr.mxu0 %v463_v5  ;;  %v329_v53 = vld [vmem:[%s652_s5] ss:$0 sm:$0xff] }
  0xa6   :  { %v210_v59 = vmul.f32 %v194_v49, %v162_v54  ;;  %354 = vmatpush3.msra.mxu0 %v229_v56  ;;  %v209_v1 = vmul.f32 %v193_v57, %v161_v55  ;;  %v169_v49 = vld [vmem:[%s648_s1] sm:$0xff]  ;;  %s432_s1 = scalar_lea.vmem %s319_s20, 128 }
  0xa7   :  { %355 = vmatprep.subr.mxu0 %v463_v5  ;;  %v105_v62 = vpop.permute.xlu0 %104  ;;  %v100_v63 = vpop.permute.xlu1 %99  ;;  %p433_p10 = scmp.ne.s32.totalorder %s319_s20, %s432_s1  ;;  %p438_p12 = scmp.lt.s32.totalorder %s432_s1, %s432_s1 }
  0xa8   :  { %v160_v2 = vmul.f32 %v560_v18, %v105_v62  ;;  %v159_v3 = vmul.f32 %v560_v18, %v100_v63  ;;  %356 = vmatpush3.msra.mxu0 %v228_v60  ;;  %v226_v9 = vadd.f32 %v210_v59, %v178_v0  ;;  %v225_v17 = vadd.f32 %v209_v1, %v177_v7 }
  0xa9   :  { %357 = vmatprep.subr.mxu0 %v463_v5  ;;  %p439_p13 = por %p438_p12, %p437_p11 }
  0xaa   :  { %v208_v8 = vmul.f32 %v192_v61, %v160_v2  ;;  %358 = vmatpush3.msra.mxu0 %v227_v4  ;;  %v207_v14 = vmul.f32 %v191_v6, %v159_v3 }
  0xab   :  { %359 = vmatprep.subr.mxu0 %v463_v5  ;;  %v95_v11 = vpop.permute.xlu0 %94  ;;  %v90_v12 = vpop.permute.xlu1 %89  ;;  %p440_p0 = pnand %p439_p13, %p433_p10 }
  0xac   :  { %v158_v15 = vmul.f32 %v560_v18, %v95_v11  ;;  %v157_v16 = vmul.f32 %v560_v18, %v90_v12  ;;  %360 = vmatpush3.msra.mxu0 %v226_v9  ;;  %v224_v22 = vadd.f32 %v208_v8, %v176_v13  ;;  %v223_v30 = vadd.f32 %v207_v14, %v175_v20 }
  0xad   :  { %361 = vmatprep.subr.mxu0 %v463_v5 }
  0xae   :  { %v206_v21 = vmul.f32 %v190_v10, %v158_v15  ;;  %362 = vmatpush3.msra.mxu0 %v225_v17  ;;  %v205_v27 = vmul.f32 %v189_v19, %v157_v16 }
  0xaf   :  { %363 = vmatprep.subr.mxu0 %v463_v5  ;;  %v85_v24 = vpop.permute.xlu0 %84  ;;  %v80_v25 = vpop.permute.xlu1 %79 }
  0xb0   :  { %v156_v28 = vmul.f32 %v560_v18, %v85_v24  ;;  %v155_v29 = vmul.f32 %v560_v18, %v80_v25  ;;  %364 = vmatpush3.msra.mxu0 %v224_v22  ;;  %v222_v34 = vadd.f32 %v206_v21, %v174_v26  ;;  %v221_v42 = vadd.f32 %v205_v27, %v173_v32 }
  0xb1   :  { %365 = vmatprep.subr.mxu0 %v463_v5 }
  0xb2   :  { %v204_v33 = vmul.f32 %v188_v23, %v156_v28  ;;  %366 = vmatpush3.msra.mxu0 %v223_v30  ;;  %v203_v39 = vmul.f32 %v187_v31, %v155_v29 }
  0xb3   :  { %367 = vmatprep.subr.mxu0 %v463_v5  ;;  %v75_v36 = vpop.permute.xlu0 %74  ;;  %v70_v37 = vpop.permute.xlu1 %69 }
  0xb4   :  { %v154_v40 = vmul.f32 %v560_v18, %v75_v36  ;;  %v153_v41 = vmul.f32 %v560_v18, %v70_v37  ;;  %368 = vmatpush3.msra.mxu0 %v222_v34  ;;  %v220_v46 = vadd.f32 %v204_v33, %v172_v38  ;;  %v219_v18 = vadd.f32 %v203_v39, %v171_v44 }
  0xb5   :  { %369 = vmatprep.subr.mxu0 %v463_v5 }
  0xb6   :  { %v202_v45 = vmul.f32 %v186_v35, %v154_v40  ;;  %370 = vmatpush3.msra.mxu0 %v221_v42  ;;  %v201_v48 = vmul.f32 %v185_v43, %v153_v41 }
  0xb7   :  { %371 = vmatprep.subr.mxu0 %v463_v5 }
  0xb8   :  { %372 = vmatpush3.msra.mxu0 %v220_v46  ;;  %v218_v50 = vadd.f32 %v202_v45, %v170_v47  ;;  %v217_v51 = vadd.f32 %v201_v48, %v169_v49 }
  0xb9   :  { %373 = vmatprep.subr.mxu0 %v463_v5 }
  0xba   :  { %374 = vmatpush3.msra.mxu0 %v219_v18 }
  0xbb   :  { %375 = vmatprep.subr.mxu0 %v463_v5 }
  0xbc   :  { %376 = vmatpush3.msra.mxu0 %v218_v50 }
  0xbd   :  { %377 = vmatprep.subr.mxu0 %v463_v5 }
  0xbe   :  { %378 = vmatpush3.msra.mxu0 %v217_v51 }
  0xbf   :  { %380 = vmatmul.mubr.f32.vlgmr.msra.gmra.mxu0 %v233_v52 }
 0x17f   :  { %v307_v54 = vpop.f32.mrf.mxu0 }
 0x180   :  { %v308_v55 = vadd.f32 %v329_v53, %v307_v54 }
 0x181   :  { %v381_v56 = vpop.f32.mrf.mxu0 }
 0x182   :  { %311 = vst [vmem:[#allocation7] sm:$0xff] %v308_v55 }
 0x183   :  { %443 = shalt.err (!%p440_p0)
}
 0x184   :  { %321 = dma.vmem_to_hbm [thread:$0]  %s319_s20, 128, %s653_s6, [#allocation4]  }
 0x185   :  { %456 = dma.done.wait [#allocation4], 128  }
 0x186   :  { %457 = vsyncadd [#allocation4], 4294967168 }
 0x187   :  { %325 = vsyncpa [#allocation3], 1 }
 0x188   :  { %326 = vsyncpa [#allocation6], 1 }
 0x189   :  { %327 = vsyncpa [#allocation4], 1 }

</bundles_post_ra>
